<compile_context>
chip_gen: v7x
topology: tpu7x:2x2x1
jax: 0.10.0
libtpu: 0.0.40
codegen_flags: <defaults>
</compile_context>

<pallas_src>
import jax
import jax.numpy as jnp
import numpy as np
from jax.experimental import pallas as pl
from jax.experimental.pallas import tpu as pltpu

LEAKY_SLOPE = 0.01  # nn.LeakyReLU() default negative_slope
BN_EPS = 1e-5       # nn.BatchNorm2d default eps


# --------------------------------------------------------------------------- #
# Kernel
# --------------------------------------------------------------------------- #
def _convblock_kernel(x_ref, wb1_ref, b1_ref, wb2_ref, b2_ref, o_ref,
                      xpad_ref, hpad_ref):
    """One batch element, both conv stages fused.

    x_ref:    (1, H, W*Cin)          bf16   input image, channels-last flattened into lanes
    wb1_ref:  (3, W*Cin,  W*Cout)    bf16   banded conv1 weights (BN1 scale folded in)
    b1_ref:   (1, W*Cout)            f32    folded bias1, tiled per output column
    wb2_ref:  (3, W*Cout, W*Cout)    bf16   banded conv2 weights (BN2 scale folded in)
    b2_ref:   (1, W*Cout)            f32    folded bias2
    o_ref:    (1, H, W*Cout)         f32    lane-dense output
    xpad_ref: VMEM (H+2, W*Cin)      f32    row-padded input scratch
    hpad_ref: VMEM (H+2, W*Cout)     f32    row-padded intermediate scratch (stays in VMEM)
    """
    H = o_ref.shape[1]

    def conv_bn_lrelu(pad_ref, wb_ref, b_ref):
        # 3x3 'same' conv expressed as 3 banded matmuls (one per kernel row dy):
        #   out[h, w*Cout+co] = sum_dy (pad[h+dy, :] @ wb[dy])[w*Cout+co]
        # The width-direction taps/padding are encoded in the band structure of wb,
        # so K = W*C (64 / 128 here) — good MXU contraction, lane-dense N = W*Cout = 128.
        n_out = wb_ref.shape[2]
        acc = jnp.zeros((H, n_out), jnp.float32)
        for dy in range(3):                                   # static unroll: 3 MXU pushes
            lhs = pad_ref[dy:dy + H, :].astype(jnp.bfloat16)  # bf16 operands, f32 accumulate
            acc = acc + jnp.dot(lhs, wb_ref[dy],
                                preferred_element_type=jnp.float32)
        y = acc + b_ref[...]                                  # folded conv-bias + BN bias
        return jnp.where(y > 0, y, LEAKY_SLOPE * y)           # LeakyReLU(0.01)

    # ---- stage 1: conv1 + bn1 + lrelu (row halo built in VMEM, not via jnp.pad) ----
    zrow_x = jnp.zeros((1, xpad_ref.shape[1]), xpad_ref.dtype)
    xpad_ref[0:1, :] = zrow_x
    xpad_ref[H + 1:H + 2, :] = zrow_x
    xpad_ref[1:H + 1, :] = x_ref[0].astype(xpad_ref.dtype)
    h = conv_bn_lrelu(xpad_ref, wb1_ref, b1_ref)              # (H, W*Cout) f32

    # ---- dropout: identity in eval mode ----
    # TODO(synk): training-mode stochastic dropout not implemented.

    # ---- stage 2: conv2 + bn2 + lrelu; intermediate never leaves VMEM ----
    zrow_h = jnp.zeros((1, hpad_ref.shape[1]), hpad_ref.dtype)
    hpad_ref[0:1, :] = zrow_h
    hpad_ref[H + 1:H + 2, :] = zrow_h
    hpad_ref[1:H + 1, :] = h
    y = conv_bn_lrelu(hpad_ref, wb2_ref, b2_ref)              # (H, W*Cout) f32

    o_ref[0] = y.astype(o_ref.dtype)


# --------------------------------------------------------------------------- #
# Wrapper-side parameter folding
# --------------------------------------------------------------------------- #
def fold_bn(conv_b, gamma, beta, rmean, rvar):
    scale = gamma / jnp.sqrt(rvar + BN_EPS)
    bias = (conv_b - rmean) * scale + beta
    return scale, bias


def build_banded_weights(w_hwio, scale, W):
    """Fold the 3 width-taps (and the width zero-padding) into a banded matmul weight.

    w_hwio: (3, 3, Cin, Cout), scale: (Cout,) BN scale folded into the weights.
    Returns (3, W*Cin, W*Cout) f32 with
        wb[dy, col*Cin+ci, w*Cout+co] = w[dy, dx, ci, co] * scale[co]  where col = w+dx-1,
    and zero where col is out of range (this *is* the padding=1 boundary handling).
    """
    kh, kw, Cin, Cout = w_hwio.shape
    w = (w_hwio * scale[None, None, None, :]).astype(jnp.float32)
    bands = []
    for dy in range(kh):
        m = jnp.zeros((W * Cin, W * Cout), jnp.float32)
        for dx in range(kw):
            # ones at [col, w] with col = w + dx - 1  ->  eye offset k = 1 - dx
            m = m + jnp.kron(jnp.eye(W, W, 1 - dx, dtype=jnp.float32), w[dy, dx])
        bands.append(m)
    return jnp.stack(bands, axis=0)


@jax.jit
def convblock_forward(x_nchw, p):
    """Full ConvBlock forward (eval mode). x: (N, Cin, H, W) -> (N, Cout, H, W)."""
    N, Cin, H, W = x_nchw.shape
    Cout = p["w1"].shape[0]

    # NCHW -> NHWC -> (N, H, W*Cin); bf16 activations in HBM.
    x2d = jnp.transpose(x_nchw, (0, 2, 3, 1)).reshape(N, H, W * Cin).astype(jnp.bfloat16)

    s1, b1 = fold_bn(p["b1"], p["gamma1"], p["beta1"], p["rmean1"], p["rvar1"])
    s2, b2 = fold_bn(p["b2"], p["gamma2"], p["beta2"], p["rmean2"], p["rvar2"])
    w1_hwio = jnp.transpose(p["w1"], (2, 3, 1, 0))            # OIHW -> HWIO
    w2_hwio = jnp.transpose(p["w2"], (2, 3, 1, 0))
    wb1 = build_banded_weights(w1_hwio, s1, W).astype(jnp.bfloat16)   # (3, W*Cin,  W*Cout)
    wb2 = build_banded_weights(w2_hwio, s2, W).astype(jnp.bfloat16)   # (3, W*Cout, W*Cout)
    bias1 = jnp.tile(b1, (W,)).reshape(1, W * Cout).astype(jnp.float32)
    bias2 = jnp.tile(b2, (W,)).reshape(1, W * Cout).astype(jnp.float32)

    out2d = pl.pallas_call(
        _convblock_kernel,
        out_shape=jax.ShapeDtypeStruct((N, H, W * Cout), jnp.float32),
        grid_spec=pltpu.PrefetchScalarGridSpec(
            num_scalar_prefetch=0,
            grid=(N,),
            in_specs=[
                pl.BlockSpec((1, H, W * Cin), lambda n: (n, 0, 0)),
                pl.BlockSpec((3, W * Cin, W * Cout), lambda n: (0, 0, 0)),
                pl.BlockSpec((1, W * Cout), lambda n: (0, 0)),
                pl.BlockSpec((3, W * Cout, W * Cout), lambda n: (0, 0, 0)),
                pl.BlockSpec((1, W * Cout), lambda n: (0, 0)),
            ],
            out_specs=pl.BlockSpec((1, H, W * Cout), lambda n: (n, 0, 0)),
            scratch_shapes=[
                pltpu.VMEM((H + 2, W * Cin), jnp.float32),    # padded input
                pltpu.VMEM((H + 2, W * Cout), jnp.float32),   # padded intermediate h
            ],
        ),
        compiler_params=pltpu.CompilerParams(
            dimension_semantics=("parallel",),
        ),
    )(x2d, wb1, bias1, wb2, bias2)

    # (N, H, W*Cout) -> (N, H, W, Cout) -> NCHW
    return jnp.transpose(out2d.reshape(N, H, W, Cout), (0, 3, 1, 2))


# --------------------------------------------------------------------------- #
# Parameters + pure-JAX reference (PyTorch eval-mode semantics)
# --------------------------------------------------------------------------- #
def make_convblock_params(key, in_channels, out_channels):
    ks = jax.random.split(key, 12)

    def conv_w(k, cin, cout):
        bound = 1.0 / np.sqrt(cin * 9)
        return jax.random.uniform(k, (cout, cin, 3, 3), jnp.float32, -bound, bound)  # OIHW

    def vec(k, c, lo=-0.5, hi=0.5):
        return jax.random.uniform(k, (c,), jnp.float32, lo, hi)

    p = {}
    p["w1"] = conv_w(ks[0], in_channels, out_channels)
    p["b1"] = vec(ks[1], out_channels)
    p["gamma1"] = 1.0 + 0.1 * vec(ks[2], out_channels)
    p["beta1"] = vec(ks[3], out_channels)
    p["rmean1"] = 0.1 * vec(ks[4], out_channels)
    p["rvar1"] = 1.0 + 0.1 * jnp.abs(vec(ks[5], out_channels))
    p["w2"] = conv_w(ks[6], out_channels, out_channels)
    p["b2"] = vec(ks[7], out_channels)
    p["gamma2"] = 1.0 + 0.1 * vec(ks[8], out_channels)
    p["beta2"] = vec(ks[9], out_channels)
    p["rmean2"] = 0.1 * vec(ks[10], out_channels)
    p["rvar2"] = 1.0 + 0.1 * jnp.abs(vec(ks[11], out_channels))
    return p


def _reference_forward(x_nchw, p):
    def step(x, w, b, gamma, beta, rmean, rvar):
        y = jax.lax.conv_general_dilated(
            x, w, window_strides=(1, 1), padding="SAME",
            dimension_numbers=("NCHW", "OIHW", "NCHW"))
        y = y + b[None, :, None, None]
        y = (y - rmean[None, :, None, None]) / jnp.sqrt(rvar + BN_EPS)[None, :, None, None]
        y = y * gamma[None, :, None, None] + beta[None, :, None, None]
        return jnp.where(y > 0, y, LEAKY_SLOPE * y)

    h = step(x_nchw, p["w1"], p["b1"], p["gamma1"], p["beta1"], p["rmean1"], p["rvar1"])
    return step(h, p["w2"], p["b2"], p["gamma2"], p["beta2"], p["rmean2"], p["rvar2"])


if __name__ == "__main__":
    N, Cin, Cout, H, W = 2, 4, 8, 16, 16
    dropout_p = 0.1  # identity in eval mode

    key = jax.random.PRNGKey(0)
    kx, kp = jax.random.split(key)
    x = jax.random.normal(kx, (N, Cin, H, W), jnp.float32)
    params = make_convblock_params(kp, Cin, Cout)

    out = convblock_forward(x, params)
    out = jax.block_until_ready(out)

    ref = _reference_forward(x, params)
    # bf16 matmul operands (f32 accumulation) -> loose but bug-catching tolerance.
    np.testing.assert_allclose(np.asarray(out), np.asarray(ref), rtol=2e-2, atol=2e-2)
    assert out.shape == (N, Cout, H, W)

    print("KERNEL_OK")
</pallas_src>

<mosaic_0001>
module attributes {stable_mosaic.version = 11 : i64} {
  func.func @_convblock_kernel(%arg0: i32, %arg1: memref<1x16x64xbf16, #tpu.memory_space<vmem>>, %arg2: memref<3x64x128xbf16, #tpu.memory_space<vmem>>, %arg3: memref<1x128xf32, #tpu.memory_space<vmem>>, %arg4: memref<3x128x128xbf16, #tpu.memory_space<vmem>>, %arg5: memref<1x128xf32, #tpu.memory_space<vmem>>, %arg6: memref<1x16x128xf32, #tpu.memory_space<vmem>>, %arg7: memref<18x64xf32, #tpu.memory_space<vmem>>, %arg8: memref<18x128xf32, #tpu.memory_space<vmem>>) attributes {dimension_semantics = [#tpu.dimension_semantics<parallel>], iteration_bounds = array<i64: 2>, scalar_prefetch = 0 : i64, scratch_operands = 2 : i64, tpu.core_type = #tpu.core_type<tc>, window_params = [{transform_indices = @transform_0, window_bounds = array<i64: 1, 16, 64>}, {pipeline_mode = #tpu.pipeline_mode<synchronous>, transform_indices = @transform_1, window_bounds = array<i64: 3, 64, 128>}, {pipeline_mode = #tpu.pipeline_mode<synchronous>, transform_indices = @transform_2, window_bounds = array<i64: 1, 128>}, {pipeline_mode = #tpu.pipeline_mode<synchronous>, transform_indices = @transform_3, window_bounds = array<i64: 3, 128, 128>}, {pipeline_mode = #tpu.pipeline_mode<synchronous>, transform_indices = @transform_4, window_bounds = array<i64: 1, 128>}, {transform_indices = @transform_5, window_bounds = array<i64: 1, 16, 128>}]} {
    %cst = arith.constant 0.000000e+00 : f32
    %0 = vector.broadcast %cst : f32 to vector<1x64xf32>
    %c0 = arith.constant 0 : index
    %c0_0 = arith.constant 0 : index
    %1 = vector.load %arg7[%c0, %c0_0] : memref<18x64xf32, #tpu.memory_space<vmem>>, vector<1x64xf32>
    tpu.vector_store %arg7[%c0, %c0_0], %0 {strides = array<i32>} : memref<18x64xf32, #tpu.memory_space<vmem>>, vector<1x64xf32>,
    %c17 = arith.constant 17 : index
    %c0_1 = arith.constant 0 : index
    %2 = vector.load %arg7[%c17, %c0_1] : memref<18x64xf32, #tpu.memory_space<vmem>>, vector<1x64xf32>
    tpu.vector_store %arg7[%c17, %c0_1], %0 {strides = array<i32>} : memref<18x64xf32, #tpu.memory_space<vmem>>, vector<1x64xf32>,
    %c0_2 = arith.constant 0 : index
    %c0_3 = arith.constant 0 : index
    %c0_4 = arith.constant 0 : index
    %3 = vector.load %arg1[%c0_2, %c0_3, %c0_4] : memref<1x16x64xbf16, #tpu.memory_space<vmem>>, vector<1x16x64xbf16>
    %4 = vector.shape_cast %3 : vector<1x16x64xbf16> to vector<16x64xbf16>
    %5 = arith.extf %4 : vector<16x64xbf16> to vector<16x64xf32>
    %c1 = arith.constant 1 : index
    %c0_5 = arith.constant 0 : index
    %6 = vector.load %arg7[%c1, %c0_5] : memref<18x64xf32, #tpu.memory_space<vmem>>, vector<16x64xf32>
    tpu.vector_store %arg7[%c1, %c0_5], %5 {strides = array<i32>} : memref<18x64xf32, #tpu.memory_space<vmem>>, vector<16x64xf32>,
    %cst_6 = arith.constant 0.000000e+00 : f32
    %7 = vector.broadcast %cst_6 : f32 to vector<16x128xf32>
    %c0_7 = arith.constant 0 : index
    %c0_8 = arith.constant 0 : index
    %8 = vector.load %arg7[%c0_7, %c0_8] : memref<18x64xf32, #tpu.memory_space<vmem>>, vector<16x64xf32>
    %9 = arith.truncf %8 : vector<16x64xf32> to vector<16x64xbf16>
    %c0_9 = arith.constant 0 : index
    %c0_10 = arith.constant 0 : index
    %c0_11 = arith.constant 0 : index
    %10 = vector.load %arg2[%c0_9, %c0_10, %c0_11] : memref<3x64x128xbf16, #tpu.memory_space<vmem>>, vector<1x64x128xbf16>
    %11 = vector.shape_cast %10 : vector<1x64x128xbf16> to vector<64x128xbf16>
    %cst_12 = arith.constant dense<0.000000e+00> : vector<16x128xf32>
    %12 = tpu.matmul %9, %11, %cst_12 {dimension_numbers = #tpu.dot_dimension_numbers<[1], [0], [0], [1], [0, 0, 1, 1], [], []>} : vector<16x64xbf16>, vector<64x128xbf16>, vector<16x128xf32> -> vector<16x128xf32>
    %13 = arith.addf %7, %12 : vector<16x128xf32>
    %c1_13 = arith.constant 1 : index
    %c0_14 = arith.constant 0 : index
    %14 = vector.load %arg7[%c1_13, %c0_14] : memref<18x64xf32, #tpu.memory_space<vmem>>, vector<16x64xf32>
    %15 = arith.truncf %14 : vector<16x64xf32> to vector<16x64xbf16>
    %c1_15 = arith.constant 1 : index
    %c0_16 = arith.constant 0 : index
    %c0_17 = arith.constant 0 : index
    %16 = vector.load %arg2[%c1_15, %c0_16, %c0_17] : memref<3x64x128xbf16, #tpu.memory_space<vmem>>, vector<1x64x128xbf16>
    %17 = vector.shape_cast %16 : vector<1x64x128xbf16> to vector<64x128xbf16>
    %cst_18 = arith.constant dense<0.000000e+00> : vector<16x128xf32>
    %18 = tpu.matmul %15, %17, %cst_18 {dimension_numbers = #tpu.dot_dimension_numbers<[1], [0], [0], [1], [0, 0, 1, 1], [], []>} : vector<16x64xbf16>, vector<64x128xbf16>, vector<16x128xf32> -> vector<16x128xf32>
    %19 = arith.addf %13, %18 : vector<16x128xf32>
    %c2 = arith.constant 2 : index
    %c0_19 = arith.constant 0 : index
    %20 = vector.load %arg7[%c2, %c0_19] : memref<18x64xf32, #tpu.memory_space<vmem>>, vector<16x64xf32>
    %21 = arith.truncf %20 : vector<16x64xf32> to vector<16x64xbf16>
    %c2_20 = arith.constant 2 : index
    %c0_21 = arith.constant 0 : index
    %c0_22 = arith.constant 0 : index
    %22 = vector.load %arg2[%c2_20, %c0_21, %c0_22] : memref<3x64x128xbf16, #tpu.memory_space<vmem>>, vector<1x64x128xbf16>
    %23 = vector.shape_cast %22 : vector<1x64x128xbf16> to vector<64x128xbf16>
    %cst_23 = arith.constant dense<0.000000e+00> : vector<16x128xf32>
    %24 = tpu.matmul %21, %23, %cst_23 {dimension_numbers = #tpu.dot_dimension_numbers<[1], [0], [0], [1], [0, 0, 1, 1], [], []>} : vector<16x64xbf16>, vector<64x128xbf16>, vector<16x128xf32> -> vector<16x128xf32>
    %25 = arith.addf %19, %24 : vector<16x128xf32>
    %c0_24 = arith.constant 0 : index
    %c0_25 = arith.constant 0 : index
    %26 = vector.load %arg3[%c0_24, %c0_25] : memref<1x128xf32, #tpu.memory_space<vmem>>, vector<1x128xf32>
    %27 = vector.broadcast %26 : vector<1x128xf32> to vector<16x128xf32>
    %28 = arith.addf %25, %27 : vector<16x128xf32>
    %cst_26 = arith.constant 0.000000e+00 : f32
    %29 = vector.broadcast %cst_26 : f32 to vector<16x128xf32>
    %30 = arith.cmpf ogt, %28, %29 : vector<16x128xf32>
    %cst_27 = arith.constant 0.00999999977 : f32
    %31 = vector.broadcast %cst_27 : f32 to vector<16x128xf32>
    %32 = arith.mulf %31, %28 : vector<16x128xf32>
    %33 = arith.select %30, %28, %32 : vector<16x128xi1>, vector<16x128xf32>
    %cst_28 = arith.constant 0.000000e+00 : f32
    %34 = vector.broadcast %cst_28 : f32 to vector<1x128xf32>
    %c0_29 = arith.constant 0 : index
    %c0_30 = arith.constant 0 : index
    %35 = vector.load %arg8[%c0_29, %c0_30] : memref<18x128xf32, #tpu.memory_space<vmem>>, vector<1x128xf32>
    tpu.vector_store %arg8[%c0_29, %c0_30], %34 {strides = array<i32>} : memref<18x128xf32, #tpu.memory_space<vmem>>, vector<1x128xf32>,
    %c17_31 = arith.constant 17 : index
    %c0_32 = arith.constant 0 : index
    %36 = vector.load %arg8[%c17_31, %c0_32] : memref<18x128xf32, #tpu.memory_space<vmem>>, vector<1x128xf32>
    tpu.vector_store %arg8[%c17_31, %c0_32], %34 {strides = array<i32>} : memref<18x128xf32, #tpu.memory_space<vmem>>, vector<1x128xf32>,
    %c1_33 = arith.constant 1 : index
    %c0_34 = arith.constant 0 : index
    %37 = vector.load %arg8[%c1_33, %c0_34] : memref<18x128xf32, #tpu.memory_space<vmem>>, vector<16x128xf32>
    tpu.vector_store %arg8[%c1_33, %c0_34], %33 {strides = array<i32>} : memref<18x128xf32, #tpu.memory_space<vmem>>, vector<16x128xf32>,
    %cst_35 = arith.constant 0.000000e+00 : f32
    %38 = vector.broadcast %cst_35 : f32 to vector<16x128xf32>
    %c0_36 = arith.constant 0 : index
    %c0_37 = arith.constant 0 : index
    %39 = vector.load %arg8[%c0_36, %c0_37] : memref<18x128xf32, #tpu.memory_space<vmem>>, vector<16x128xf32>
    %40 = arith.truncf %39 : vector<16x128xf32> to vector<16x128xbf16>
    %c0_38 = arith.constant 0 : index
    %c0_39 = arith.constant 0 : index
    %c0_40 = arith.constant 0 : index
    %41 = vector.load %arg4[%c0_38, %c0_39, %c0_40] : memref<3x128x128xbf16, #tpu.memory_space<vmem>>, vector<1x128x128xbf16>
    %42 = vector.shape_cast %41 : vector<1x128x128xbf16> to vector<128x128xbf16>
    %cst_41 = arith.constant dense<0.000000e+00> : vector<16x128xf32>
    %43 = tpu.matmul %40, %42, %cst_41 {dimension_numbers = #tpu.dot_dimension_numbers<[1], [0], [0], [1], [0, 0, 1, 1], [], []>} : vector<16x128xbf16>, vector<128x128xbf16>, vector<16x128xf32> -> vector<16x128xf32>
    %44 = arith.addf %38, %43 : vector<16x128xf32>
    %c1_42 = arith.constant 1 : index
    %c0_43 = arith.constant 0 : index
    %45 = vector.load %arg8[%c1_42, %c0_43] : memref<18x128xf32, #tpu.memory_space<vmem>>, vector<16x128xf32>
    %46 = arith.truncf %45 : vector<16x128xf32> to vector<16x128xbf16>
    %c1_44 = arith.constant 1 : index
    %c0_45 = arith.constant 0 : index
    %c0_46 = arith.constant 0 : index
    %47 = vector.load %arg4[%c1_44, %c0_45, %c0_46] : memref<3x128x128xbf16, #tpu.memory_space<vmem>>, vector<1x128x128xbf16>
    %48 = vector.shape_cast %47 : vector<1x128x128xbf16> to vector<128x128xbf16>
    %cst_47 = arith.constant dense<0.000000e+00> : vector<16x128xf32>
    %49 = tpu.matmul %46, %48, %cst_47 {dimension_numbers = #tpu.dot_dimension_numbers<[1], [0], [0], [1], [0, 0, 1, 1], [], []>} : vector<16x128xbf16>, vector<128x128xbf16>, vector<16x128xf32> -> vector<16x128xf32>
    %50 = arith.addf %44, %49 : vector<16x128xf32>
    %c2_48 = arith.constant 2 : index
    %c0_49 = arith.constant 0 : index
    %51 = vector.load %arg8[%c2_48, %c0_49] : memref<18x128xf32, #tpu.memory_space<vmem>>, vector<16x128xf32>
    %52 = arith.truncf %51 : vector<16x128xf32> to vector<16x128xbf16>
    %c2_50 = arith.constant 2 : index
    %c0_51 = arith.constant 0 : index
    %c0_52 = arith.constant 0 : index
    %53 = vector.load %arg4[%c2_50, %c0_51, %c0_52] : memref<3x128x128xbf16, #tpu.memory_space<vmem>>, vector<1x128x128xbf16>
    %54 = vector.shape_cast %53 : vector<1x128x128xbf16> to vector<128x128xbf16>
    %cst_53 = arith.constant dense<0.000000e+00> : vector<16x128xf32>
    %55 = tpu.matmul %52, %54, %cst_53 {dimension_numbers = #tpu.dot_dimension_numbers<[1], [0], [0], [1], [0, 0, 1, 1], [], []>} : vector<16x128xbf16>, vector<128x128xbf16>, vector<16x128xf32> -> vector<16x128xf32>
    %56 = arith.addf %50, %55 : vector<16x128xf32>
    %c0_54 = arith.constant 0 : index
    %c0_55 = arith.constant 0 : index
    %57 = vector.load %arg5[%c0_54, %c0_55] : memref<1x128xf32, #tpu.memory_space<vmem>>, vector<1x128xf32>
    %58 = vector.broadcast %57 : vector<1x128xf32> to vector<16x128xf32>
    %59 = arith.addf %56, %58 : vector<16x128xf32>
    %cst_56 = arith.constant 0.000000e+00 : f32
    %60 = vector.broadcast %cst_56 : f32 to vector<16x128xf32>
    %61 = arith.cmpf ogt, %59, %60 : vector<16x128xf32>
    %cst_57 = arith.constant 0.00999999977 : f32
    %62 = vector.broadcast %cst_57 : f32 to vector<16x128xf32>
    %63 = arith.mulf %62, %59 : vector<16x128xf32>
    %64 = arith.select %61, %59, %63 : vector<16x128xi1>, vector<16x128xf32>
    %c0_58 = arith.constant 0 : index
    %c0_59 = arith.constant 0 : index
    %c0_60 = arith.constant 0 : index
    %65 = vector.load %arg6[%c0_58, %c0_59, %c0_60] : memref<1x16x128xf32, #tpu.memory_space<vmem>>, vector<1x16x128xf32>
    %66 = vector.shape_cast %65 : vector<1x16x128xf32> to vector<16x128xf32>
    %67 = vector.shape_cast %64 : vector<16x128xf32> to vector<1x16x128xf32>
    tpu.vector_store %arg6[%c0_58, %c0_59, %c0_60], %67 {strides = array<i32>} : memref<1x16x128xf32, #tpu.memory_space<vmem>>, vector<1x16x128xf32>,
    return
  }
  func.func @transform_0(%arg0: i32) -> (i32, i32, i32) {
    %c0_i32 = arith.constant 0 : i32
    %c0_i32_0 = arith.constant 0 : i32
    %c0_i32_1 = arith.constant 0 : i32
    return %arg0, %c0_i32, %c0_i32_0 : i32, i32, i32
  }
  func.func @transform_1(%arg0: i32) -> (i32, i32, i32) {
    %c0_i32 = arith.constant 0 : i32
    %c0_i32_0 = arith.constant 0 : i32
    %c0_i32_1 = arith.constant 0 : i32
    %c0_i32_2 = arith.constant 0 : i32
    return %c0_i32, %c0_i32_0, %c0_i32_1 : i32, i32, i32
  }
  func.func @transform_2(%arg0: i32) -> (i32, i32) {
    %c0_i32 = arith.constant 0 : i32
    %c0_i32_0 = arith.constant 0 : i32
    %c0_i32_1 = arith.constant 0 : i32
    return %c0_i32, %c0_i32_0 : i32, i32
  }
  func.func @transform_3(%arg0: i32) -> (i32, i32, i32) {
    %c0_i32 = arith.constant 0 : i32
    %c0_i32_0 = arith.constant 0 : i32
    %c0_i32_1 = arith.constant 0 : i32
    %c0_i32_2 = arith.constant 0 : i32
    return %c0_i32, %c0_i32_0, %c0_i32_1 : i32, i32, i32
  }
  func.func @transform_4(%arg0: i32) -> (i32, i32) {
    %c0_i32 = arith.constant 0 : i32
    %c0_i32_0 = arith.constant 0 : i32
    %c0_i32_1 = arith.constant 0 : i32
    return %c0_i32, %c0_i32_0 : i32, i32
  }
  func.func @transform_5(%arg0: i32) -> (i32, i32, i32) {
    %c0_i32 = arith.constant 0 : i32
    %c0_i32_0 = arith.constant 0 : i32
    %c0_i32_1 = arith.constant 0 : i32
    return %arg0, %c0_i32, %c0_i32_0 : i32, i32, i32
  }
}

</mosaic_0001>

<bundles_post_ra>
// kernel: tile.13
= control target key start
LH: loop header
LB: loop body
LE: loop exit
PB: predicated region body
PF: predicated region fallthrough
CT: control target
= control target key end

     0   :  { %s28_s0 = inlined_call_operand.vmem [shape: f32[8], index: 0, kind: input, shape index: {}]   ;;  %s29_s1 = inlined_call_operand.vmem [shape: f32[16,8], index: 1, kind: output, shape index: {}]  }
   0x1   :  { %v4_v0 = vld [vmem:[%s28_s0] ss:$0 sm:$0xff] }
   0x2   :  { %5 = vst [vmem:[%s29_s1] sm:$0xff] %v4_v0  ;;  %8 = vst [vmem:[%s29_s1 + $0x8] sm:$0xff] %v4_v0 }

// kernel: tile.14
= control target key start
LH: loop header
LB: loop body
LE: loop exit
PB: predicated region body
PF: predicated region fallthrough
CT: control target
= control target key end

     0   :  { %s131_s10 = smov 120   ;;  %s132_s11 = smov 104   ;;  %vm3_vm0 = vcmask 64512   ;;  %vm9_vm1 = vcmask 1048512   ;;  %vm15_vm2 = vcmask 982912   ;;  %vm21_vm3 = vcmask 917312   ;;  %s207_s0 = inlined_call_operand.vmem [shape: f32[16,8], index: 0, kind: input, shape index: {}]   ;;  %s208_s1 = inlined_call_operand.vmem [shape: f32[1,128], index: 1, kind: output, shape index: {}]  }
   0x1   :  { %v101_v0 = vld [vmem:[%s207_s0 + $0xf] sm:$0x1]   ;;  %v103_v1 = vld [vmem:[%s207_s0 + $0xd] sm:$0x1]   ;;  %v102_v2 = vld [vmem:[%s207_s0 + $0xe] sm:$0x1]  }
   0x2   :  { %7 = vrot.lane.b32.xlu0 %v101_v0, %s131_s10  ;;  %19 = vrot.lane.b32.xlu1 %v103_v1, %s132_s11  ;;  %v104_v3 = vld [vmem:[%s207_s0 + $0xc] sm:$0x1]   ;;  %s133_s16 = smov 112   ;;  %s134_s17 = smov 96   ;;  %v105_v4 = vld [vmem:[%s207_s0 + $0xb] sm:$0x1]  }
   0x3   :  { %v106_v5 = vld [vmem:[%s207_s0 + $0xa] sm:$0x1]   ;;  %v2_v6 = vld [vmem:[%s207_s0] sm:$0x1]   ;;  %s135_s24 = smov 88   ;;  %s136_s25 = smov 80  }
   0x4   :  { %4 = vst.msk [vmem:[#allocation0] sm:$0x1] %vm3_vm0, %v2_v6   ;;  %v107_v7 = vld [vmem:[%s207_s0 + $0x9] sm:$0x1]   ;;  %v108_v8 = vld [vmem:[%s207_s0 + $0x8] sm:$0x1]  }
   0x5   :  { %s137_s30 = smov 72   ;;  %s138_s2 = smov 64   ;;  %v109_v9 = vld [vmem:[%s207_s0 + $0x7] sm:$0x1]   ;;  %v110_v10 = vld [vmem:[%s207_s0 + $0x6] sm:$0x1]  }
   0x6   :  { %13 = vrot.lane.b32.xlu0 %v102_v2, %s133_s16  ;;  %25 = vrot.lane.b32.xlu1 %v104_v3, %s134_s17  ;;  %s139_s7 = smov 56   ;;  %s140_s8 = smov 48   ;;  %v111_v11 = vld [vmem:[%s207_s0 + $0x5] sm:$0x1]   ;;  %v112_v12 = vld [vmem:[%s207_s0 + $0x4] sm:$0x1]  }
   0x7   :  { %s141_s13 = smov 40   ;;  %s142_s14 = smov 32   ;;  %v113_v13 = vld [vmem:[%s207_s0 + $0x3] sm:$0x1]   ;;  %v114_v14 = vld [vmem:[%s207_s0 + $0x2] sm:$0x1]  }
   0x8   :  { %s143_s19 = smov 24   ;;  %s144_s20 = smov 16   ;;  %v115_v15 = vld [vmem:[%s207_s0 + $0x1] sm:$0x1]   ;;  %vm27_vm4 = vcmask 851712   ;;  %vm33_vm5 = vcmask 786112  }
   0x9   :  { %s145_s0 = smov 8   ;;  %vm39_vm6 = vcmask 720512   ;;  %vm45_vm7 = vcmask 654912   ;;  %vm51_vm8 = vcmask 589312   ;;  %vm57_vm9 = vcmask 523712  }
   0xa   :  { %31 = vrot.lane.b32.xlu0 %v105_v4, %s135_s24  ;;  %37 = vrot.lane.b32.xlu1 %v106_v5, %s136_s25  ;;  %vm63_vm10 = vcmask 458112   ;;  %vm69_vm11 = vcmask 392512   ;;  %vm75_vm12 = vcmask 326912   ;;  %vm81_vm13 = vcmask 261312  }
   0xb   :  { %vm87_vm14 = vcmask 195712   ;;  %vm93_vm15 = vcmask 130112  }
   0xe   :  { %43 = vrot.lane.b32.xlu0 %v107_v7, %s137_s30  ;;  %49 = vrot.lane.b32.xlu1 %v108_v8, %s138_s2 }
  0x12   :  { %55 = vrot.lane.b32.xlu0 %v109_v9, %s139_s7  ;;  %61 = vrot.lane.b32.xlu1 %v110_v10, %s140_s8 }
  0x16   :  { %67 = vrot.lane.b32.xlu0 %v111_v11, %s141_s13  ;;  %73 = vrot.lane.b32.xlu1 %v112_v12, %s142_s14 }
  0x1a   :  { %79 = vrot.lane.b32.xlu0 %v113_v13, %s143_s19  ;;  %85 = vrot.lane.b32.xlu1 %v114_v14, %s144_s20 }
  0x1e   :  { %91 = vrot.lane.b32.xlu0 %v115_v15, %s145_s0 }
  0x74   :  { %v8_v16 = vpop.permute.xlu0 %7   ;;  %v20_v17 = vpop.permute.xlu1 %19  }
  0x75   :  { %10 = vst.msk [vmem:[#allocation0] sm:$0x1] %vm9_vm1, %v8_v16  }
  0x78   :  { %v14_v18 = vpop.permute.xlu0 %13   ;;  %v26_v19 = vpop.permute.xlu1 %25  }
  0x79   :  { %16 = vst.msk [vmem:[#allocation0] sm:$0x1] %vm15_vm2, %v14_v18  }
  0x7a   :  { %22 = vst.msk [vmem:[#allocation0] sm:$0x1] %vm21_vm3, %v20_v17  }
  0x7b   :  { %28 = vst.msk [vmem:[#allocation0] sm:$0x1] %vm27_vm4, %v26_v19  }
  0x7c   :  { %v32_v20 = vpop.permute.xlu0 %31   ;;  %v38_v21 = vpop.permute.xlu1 %37  }
  0x7d   :  { %34 = vst.msk [vmem:[#allocation0] sm:$0x1] %vm33_vm5, %v32_v20  }
  0x7e   :  { %40 = vst.msk [vmem:[#allocation0] sm:$0x1] %vm39_vm6, %v38_v21  }
  0x80   :  { %v44_v22 = vpop.permute.xlu0 %43   ;;  %v50_v23 = vpop.permute.xlu1 %49  }
  0x81   :  { %46 = vst.msk [vmem:[#allocation0] sm:$0x1] %vm45_vm7, %v44_v22  }
  0x82   :  { %52 = vst.msk [vmem:[#allocation0] sm:$0x1] %vm51_vm8, %v50_v23  }
  0x84   :  { %v56_v24 = vpop.permute.xlu0 %55   ;;  %v62_v25 = vpop.permute.xlu1 %61  }
  0x85   :  { %58 = vst.msk [vmem:[#allocation0] sm:$0x1] %vm57_vm9, %v56_v24  }
  0x86   :  { %64 = vst.msk [vmem:[#allocation0] sm:$0x1] %vm63_vm10, %v62_v25  }
  0x88   :  { %v68_v26 = vpop.permute.xlu0 %67   ;;  %v74_v27 = vpop.permute.xlu1 %73  }
  0x89   :  { %70 = vst.msk [vmem:[#allocation0] sm:$0x1] %vm69_vm11, %v68_v26  }
  0x8a   :  { %76 = vst.msk [vmem:[#allocation0] sm:$0x1] %vm75_vm12, %v74_v27  }
  0x8c   :  { %v80_v28 = vpop.permute.xlu0 %79   ;;  %v86_v29 = vpop.permute.xlu1 %85  }
  0x8d   :  { %82 = vst.msk [vmem:[#allocation0] sm:$0x1] %vm81_vm13, %v80_v28  }
  0x8e   :  { %88 = vst.msk [vmem:[#allocation0] sm:$0x1] %vm87_vm14, %v86_v29  }
  0x90   :  { %v92_v30 = vpop.permute.xlu0 %91  }
  0x91   :  { %94 = vst.msk [vmem:[#allocation0] sm:$0x1] %vm93_vm15, %v92_v30  }
  0x98   :  { %v98_v31 = vld [vmem:[#allocation0] sm:$0x1] }
  0x99   :  { %100 = vst [vmem:[%s208_s1] sm:$0x1] %v98_v31 }

// kernel: convblock_forward.1
= control target key start
LH: loop header
LB: loop body
LE: loop exit
PB: predicated region body
PF: predicated region fallthrough
CT: control target
= control target key end

     0   :  { %s1226_s18 = smov 0   ;;  %s1418_s0 = inlined_call_operand.vmem [shape: bf16[2,16,64], index: 0, kind: input, shape index: {}]   ;;  %s1419_s1 = inlined_call_operand.vmem [shape: bf16[3,64,128], index: 1, kind: input, shape index: {}]   ;;  %s1420_s2 = inlined_call_operand.vmem [shape: f32[1,128], index: 2, kind: input, shape index: {}]   ;;  %s1421_s3 = inlined_call_operand.vmem [shape: bf16[3,128,128], index: 3, kind: input, shape index: {}]   ;;  %s1422_s4 = inlined_call_operand.vmem [shape: f32[1,128], index: 4, kind: input, shape index: {}]   ;;  %s1423_s5 = inlined_call_operand.vmem [shape: f32[2,16,128], index: 5, kind: output, shape index: {}]  }
   0x1 LB: > { %s896_s19 = sadd.s32 4294967295, %s1192_s18   ;;  %p900_p0 = scmp.ge.s32.totalorder %s1192_s18, 1  ;;  %s1192_s18 = sphi %s1226_s18, %s15_s18  }
   0x2   : > { %p187_p1 = scmp.lt.s32.totalorder %s1192_s18, 3 }
   0x4   : > { %p188_p2 = pnand %p900_p0, %p187_p1 }
   0x5   : > { %v1150_v0 = vld [vmem:[%s1419_s1 + $0x20] sm:$0xff] (!%p188_p2)   ;;  %v1194_v1 = vmov (!%p188_p2), 0.0   ;;  %v1152_v3 = vld [vmem:[%s1419_s1 + $0x28] sm:$0xff] (!%p188_p2)   ;;  %vm1195_vm0 = vmmov (!%p188_p2), 0   ;;  %p215_p3 = scmp.lt.s32.totalorder (!%p188_p2), %s896_s19, 1  ;;  %vm226_vm1 = vcmask (!%p188_p2), 516096  }
   0x6   : > { %191 = sbr.rel (%p188_p2) target bundleno = 522 (0x20a), region = 40  ;;  %1044 = vmatprep.subr.bf16.mxu0 (!%p188_p2), %v1194_v1  ;;  %492 = vst [vmem:[#allocation3] sm:$0x1] (!%p188_p2), %v1194_v1  ;;  %493 = vst [vmem:[#allocation3 + $0x11] sm:$0x1] (!%p188_p2), %v1194_v1  ;;  %1056 = vmatprep.subr.bf16.mxu1 (!%p188_p2), %v1194_v1  ;;  %v1151_v2 = vld [vmem:[%s1419_s1] sm:$0xff] (!%p188_p2)  }
   0x7   : > { %1045 = vmatpush3.bf16.msra.mxu0 (!%p188_p2), %v1150_v0  ;;  %1052 = vmatprep.mubr.msk.bf16.mxu0 (!%p188_p2), %vm1195_vm0, %v1194_v1  ;;  %v1153_v4 = vld [vmem:[%s1419_s1 + $0x8] sm:$0xff] (!%p188_p2)   ;;  %v1154_v5 = vld [vmem:[%s1419_s1 + $0x30] sm:$0xff] (!%p188_p2)   ;;  %227 = vst.msk [vmem:[#allocation2] sm:$0x1] (!%p188_p2), %vm226_vm1, %v1194_v1  ;;  %228 = vst.msk [vmem:[#allocation2 + $0x11] sm:$0x1] (!%p188_p2), %vm226_vm1, %v1194_v1 }
   0x8   : > { %1057 = vmatpush3.bf16.msra.mxu1 (!%p188_p2), %v1151_v2  ;;  %1046 = vmatprep.subr.bf16.mxu0 (!%p188_p2), %v1194_v1  ;;  %v1155_v6 = vld [vmem:[%s1419_s1 + $0x10] sm:$0xff] (!%p188_p2)   ;;  %vm233_vm2 = vcmask (!%p188_p2), 523264   ;;  %v1156_v10 = vld [vmem:[%s1419_s1 + $0x38] sm:$0xff] (!%p188_p2)   ;;  %v1158_v12 = vld [vmem:[%s1419_s1 + $0x40] sm:$0xff] (!%p188_p2)  }
   0x9   : > { %1058 = vmatprep.subr.bf16.mxu1 (!%p188_p2), %v1194_v1  ;;  %1064 = vmatprep.mubr.msk.bf16.mxu1 (!%p188_p2), %vm1195_vm0, %v1194_v1  ;;  %v1157_v11 = vld [vmem:[%s1419_s1 + $0x18] sm:$0xff] (!%p188_p2)   ;;  %v1159_v19 = vld [vmem:[%s1419_s1 + $0x48] sm:$0xff] (!%p188_p2)   ;;  %v1160_v20 = vld [vmem:[%s1419_s1 + $0x50] sm:$0xff] (!%p188_p2)  }
   0xa   : > { %v1161_v21 = vld [vmem:[%s1419_s1 + $0x58] sm:$0xff] (!%p188_p2)   ;;  %v1162_v25 = vld [vmem:[%s1421_s3 + $0x40] sm:$0xff] (!%p188_p2)   ;;  %v1164_v26 = vld [vmem:[%s1421_s3 + $0x48] sm:$0xff] (!%p188_p2)  }
   0xb   : > { %1047 = vmatpush3.bf16.msra.mxu0 (!%p188_p2), %v1152_v3  ;;  %v1166_v27 = vld [vmem:[%s1421_s3 + $0x50] sm:$0xff] (!%p188_p2)   ;;  %v1163_v28 = vld [vmem:[%s1421_s3] sm:$0xff] (!%p188_p2)   ;;  %v1165_v29 = vld [vmem:[%s1421_s3 + $0x8] sm:$0xff] (!%p188_p2)  }
   0xc   : > { %1059 = vmatpush3.bf16.msra.mxu1 (!%p188_p2), %v1153_v4  ;;  %1048 = vmatprep.subr.bf16.mxu0 (!%p188_p2), %v1194_v1  ;;  %v1168_v30 = vld [vmem:[%s1421_s3 + $0x58] sm:$0xff] (!%p188_p2)   ;;  %v1167_v31 = vld [vmem:[%s1421_s3 + $0x10] sm:$0xff] (!%p188_p2)   ;;  %v1170_v32 = vld [vmem:[%s1421_s3 + $0x60] sm:$0xff] (!%p188_p2)  }
   0xd   : > { %s1425_s19 = smov (!%p215_p3, %s896_s19), 1  ;;  %1060 = vmatprep.subr.bf16.mxu1 %v1194_v1  ;;  %v1172_v33 = vld [vmem:[%s1421_s3 + $0x68] sm:$0xff]   ;;  %v1169_v34 = vld [vmem:[%s1421_s3 + $0x18] sm:$0xff]   ;;  %v1174_v35 = vld [vmem:[%s1421_s3 + $0x70] sm:$0xff]  }
   0xe   : > { %s996_s30 = sshll.u32 %s1425_s19, 3  ;;  %v1171_v36 = vld [vmem:[%s1421_s3 + $0x20] sm:$0xff]   ;;  %v1176_v37 = vld [vmem:[%s1421_s3 + $0x78] sm:$0xff]   ;;  %v1173_v38 = vld [vmem:[%s1421_s3 + $0x28] sm:$0xff]   ;;  %s997_s6 = sshll.u32 %s1425_s19, 4 }
   0xf   : > { %s219_s10 = scalar_lea.vmem %s1418_s0, %s996_s30  ;;  %1049 = vmatpush3.bf16.msra.mxu0 %v1154_v5  ;;  %v1175_v39 = vld [vmem:[%s1421_s3 + $0x30] sm:$0xff]   ;;  %v1177_v40 = vld [vmem:[%s1421_s3 + $0x38] sm:$0xff]   ;;  %v936_v52 = vld [vmem:[%s1420_s2] ss:$0 sm:$0xff]  ;;  %s224_s9 = scalar_lea.vmem %s1423_s5, %s997_s6 }
  0x10   : > { %v999_v7 = vld [vmem:[%s219_s10] sm:$0xff]   ;;  %1061 = vmatpush3.bf16.msra.mxu1 %v1155_v6  ;;  %1050 = vmatprep.subr.bf16.mxu0 %v1194_v1  ;;  %v1179_v3 = vld [vmem:[%s1421_s3 + $0x88] sm:$0xff]   ;;  %v1180_v6 = vld [vmem:[%s1421_s3 + $0x90] sm:$0xff]  }
  0x11   : > { %v1000_v8 = vunpack.c.l.bf16 %v999_v7  ;;  %v1001_v9 = vunpack.c.h.bf16 %v999_v7  ;;  %1062 = vmatprep.subr.bf16.mxu1 %v1194_v1  ;;  %v1178_v0 = vld [vmem:[%s1421_s3 + $0x80] sm:$0xff]  }
  0x13   : > { %234 = vst.msk [vmem:[#allocation2 + $0x1] sm:$0xff] %vm233_vm2, %v1000_v8  ;;  %235 = vst.msk [vmem:[#allocation2 + $0x9] sm:$0xff] %vm233_vm2, %v1001_v9  ;;  %1051 = vmatpush3.bf16.msra.mxu0 %v1156_v10  ;;  %v1181_v8 = vld [vmem:[%s1421_s3 + $0x98] sm:$0xff]   ;;  %v1182_v9 = vld [vmem:[%s1421_s3 + $0xa0] sm:$0xff]  }
  0x14   : > { %1063 = vmatpush3.bf16.msra.mxu1 %v1157_v11  ;;  %1068 = vmatprep.subr.bf16.mxu0 %v1194_v1  ;;  %v1183_v10 = vld [vmem:[%s1421_s3 + $0xa8] sm:$0xff]   ;;  %v1184_v11 = vld [vmem:[%s1421_s3 + $0xb0] sm:$0xff]  }
  0x15   : > { %1080 = vmatprep.subr.bf16.mxu1 %v1194_v1 }
  0x1a   : > { %v247_v13 = vld [vmem:[#allocation2 + $0x1] sm:$0xff]  ;;  %v248_v14 = vld [vmem:[#allocation2 + $0x9] sm:$0xff] }
  0x1b   : > { %v236_v15 = vld [vmem:[#allocation2] sm:$0xff]  ;;  %v249_v16 = vpack.c.bf16 %v248_v14, %v247_v13  ;;  %v237_v17 = vld [vmem:[#allocation2 + $0x8] sm:$0xff] }
  0x1c   : > { %v238_v18 = vpack.c.bf16 %v237_v17, %v236_v15  ;;  %v395_v22 = vld [vmem:[#allocation2 + $0x2] sm:$0xff]  ;;  %v396_v23 = vld [vmem:[#allocation2 + $0xa] sm:$0xff] }
  0x1d   : > { %1053 = vmatmul.mubr.msk.bf16.vlgmr.msra.gmra.mrb[0].mxu0 %vm233_vm2, %v249_v16  ;;  %v397_v24 = vpack.c.bf16 %v396_v23, %v395_v22 }
  0x1e   : > { %1065 = vmatmul.mubr.msk.bf16.vlgmr.msra.gmra.mrb[0].mxu1 %vm233_vm2, %v238_v18  ;;  %1069 = vmatpush3.bf16.msra.mxu0 %v1158_v12  ;;  %v1185_v12 = vld [vmem:[%s1421_s3 + $0xb8] sm:$0xff]  }
  0x1f   : > { %1070 = vmatprep.subr.bf16.mxu0 %v1194_v1  ;;  %1076 = vmatprep.mubr.msk.bf16.mxu0 %vm1195_vm0, %v1194_v1 }
  0x20   : > { %1096 = vmatprep.mubr.msk.bf16.mxu1 %vm1195_vm0, %v1194_v1  ;;  %1081 = vmatpush3.bf16.msra.mxu1 %v1162_v25 }
  0x21   : > { %1082 = vmatprep.subr.bf16.mxu1 %v1194_v1 }
  0x22   : > { %1071 = vmatpush3.bf16.msra.mxu0 %v1159_v19 }
  0x23   : > { %1072 = vmatprep.subr.bf16.mxu0 %v1194_v1 }
  0x24   : > { %1083 = vmatpush3.bf16.msra.mxu1 %v1164_v26 }
  0x25   : > { %1084 = vmatprep.subr.bf16.mxu1 %v1194_v1 }
  0x26   : > { %1073 = vmatpush3.bf16.msra.mxu0 %v1160_v20 }
  0x27   : > { %1074 = vmatprep.subr.bf16.mxu0 %v1194_v1 }
  0x28   : > { %1085 = vmatpush3.bf16.msra.mxu1 %v1166_v27 }
  0x29   : > { %1086 = vmatprep.subr.bf16.mxu1 %v1194_v1 }
  0x2a   : > { %1075 = vmatpush3.bf16.msra.mxu0 %v1161_v21 }
  0x2b   : > { %1100 = vmatprep.subr.bf16.mxu0 %v1194_v1 }
  0x2c   : > { %1087 = vmatpush3.bf16.msra.mxu1 %v1168_v30 }
  0x2d   : > { %1077 = vmatmul.mubr.msk.bf16.vlgmr.msra.gmra.mrb[4].mxu0 %vm233_vm2, %v397_v24  ;;  %1088 = vmatprep.subr.bf16.mxu1 %v1194_v1 }
  0x2e   : > { %1116 = vmatprep.mubr.msk.bf16.mxu0 %vm1195_vm0, %v1194_v1  ;;  %1101 = vmatpush3.bf16.msra.mxu0 %v1163_v28 }
  0x2f   : > { %1102 = vmatprep.subr.bf16.mxu0 %v1194_v1 }
  0x30   : > { %1089 = vmatpush3.bf16.msra.mxu1 %v1170_v32 }
  0x31   : > { %1090 = vmatprep.subr.bf16.mxu1 %v1194_v1 }
  0x32   : > { %1103 = vmatpush3.bf16.msra.mxu0 %v1165_v29 }
  0x33   : > { %1104 = vmatprep.subr.bf16.mxu0 %v1194_v1 }
  0x34   : > { %1091 = vmatpush3.bf16.msra.mxu1 %v1172_v33 }
  0x35   : > { %1092 = vmatprep.subr.bf16.mxu1 %v1194_v1 }
  0x36   : > { %1105 = vmatpush3.bf16.msra.mxu0 %v1167_v31 }
  0x37   : > { %1106 = vmatprep.subr.bf16.mxu0 %v1194_v1 }
  0x38   : > { %1093 = vmatpush3.bf16.msra.mxu1 %v1174_v35 }
  0x39   : > { %1094 = vmatprep.subr.bf16.mxu1 %v1194_v1 }
  0x3a   : > { %1107 = vmatpush3.bf16.msra.mxu0 %v1169_v34 }
  0x3b   : > { %1108 = vmatprep.subr.bf16.mxu0 %v1194_v1 }
  0x3c   : > { %1095 = vmatpush3.bf16.msra.mxu1 %v1176_v37 }
  0x3d   : > { %1120 = vmatprep.subr.bf16.mxu1 %v1194_v1 }
  0x3e   : > { %1109 = vmatpush3.bf16.msra.mxu0 %v1171_v36 }
  0x3f   : > { %1110 = vmatprep.subr.bf16.mxu0 %v1194_v1 }
  0x42   : > { %1111 = vmatpush3.bf16.msra.mxu0 %v1173_v38 }
  0x43   : > { %1112 = vmatprep.subr.bf16.mxu0 %v1194_v1 }
  0x46   : > { %1113 = vmatpush3.bf16.msra.mxu0 %v1175_v39 }
  0x47   : > { %1114 = vmatprep.subr.bf16.mxu0 %v1194_v1 }
  0x4a   : > { %1115 = vmatpush3.bf16.msra.mxu0 %v1177_v40 }
  0xf0   : > { %v320_v41 = vpop.f32.mrb[0].mxu0 }
  0xf1   : > { %v388_v42 = vpop.f32.mrb[0].mxu1  ;;  %v1054_v43 = vpop.f32.mrb[1].mxu0 }
  0xf2   : > { %v389_v44 = vadd.f32 %v388_v42, %v320_v41  ;;  %v1066_v45 = vpop.f32.mrb[1].mxu1  ;;  %v323_v46 = vpop.f32.mrb[2].mxu0 }
  0xf3   : > { %v391_v47 = vpop.f32.mrb[2].mxu1  ;;  %v1055_v48 = vpop.f32.mrb[3].mxu0 }
  0xf4   : > { %v392_v49 = vadd.f32 %v391_v47, %v323_v46  ;;  %v1067_v50 = vpop.f32.mrb[3].mxu1 }
 0x100   : > { %v468_v51 = vpop.f32.mrb[4].mxu0 }
 0x101   : > { %v475_v53 = vadd.f32 %v468_v51, %v389_v44  ;;  %v1078_v54 = vpop.f32.mrb[5].mxu0 }
 0x102   : > { %v471_v55 = vpop.f32.mrb[6].mxu0 }
 0x103   : > { %v484_v56 = vadd.f32 %v936_v52, %v475_v53  ;;  %v476_v57 = vadd.f32 %v471_v55, %v392_v49  ;;  %v1079_v58 = vpop.f32.mrb[7].mxu0 }
 0x105   : > { %vm486_vm3 = vcmp.gt.f32.partialorder %v484_v56, 0.0  ;;  %v488_v59 = vmul.f32 0.01, %v484_v56  ;;  %v485_v60 = vadd.f32 %v936_v52, %v476_v57 }
 0x107   : > { %v490_v61 = vsel %vm486_vm3, %v484_v56, %v488_v59  ;;  %vm487_vm4 = vcmp.gt.f32.partialorder %v485_v60, 0.0  ;;  %v489_v62 = vmul.f32 0.01, %v485_v60 }
 0x108   : > { %494 = vst [vmem:[#allocation3 + $0x1] sm:$0xff] %v490_v61 }
 0x109   : > { %v491_v63 = vsel %vm487_vm4, %v485_v60, %v489_v62 }
 0x10a   : > { %495 = vst [vmem:[#allocation3 + $0x9] sm:$0xff] %v491_v63  ;;  %v517_v2 = vpack.c.bf16 %v491_v63, %v490_v61 }
 0x10c   : > { %1097 = vmatmul.mubr.bf16.vlgmr.msra.gmra.mrb[4].mxu1 %v517_v2 }
 0x10d   : > { %1121 = vmatpush3.bf16.msra.mxu1 %v1178_v0  ;;  %1136 = vmatprep.mubr.msk.bf16.mxu1 %vm1195_vm0, %v1194_v1 }
 0x10e   : > { %1122 = vmatprep.subr.bf16.mxu1 %v1194_v1 }
 0x10f   : > { %v496_v4 = vld [vmem:[#allocation3] sm:$0xff] }
 0x111   : > { %v497_v5 = vld [vmem:[#allocation3 + $0x8] sm:$0xff]  ;;  %1123 = vmatpush3.bf16.msra.mxu1 %v1179_v3 }
 0x112   : > { %v498_v7 = vpack.c.bf16 %v497_v5, %v496_v4  ;;  %1124 = vmatprep.subr.bf16.mxu1 %v1194_v1  ;;  %v713_v13 = vld [vmem:[#allocation3 + $0x2] sm:$0xff]  ;;  %v714_v14 = vld [vmem:[#allocation3 + $0xa] sm:$0xff] }
 0x113   : > { %v715_v15 = vpack.c.bf16 %v714_v14, %v713_v13 }
 0x114   : > { %1117 = vmatmul.mubr.bf16.vlgmr.msra.gmra.mrb[8].mxu0 %v498_v7 }
 0x115   : > { %1125 = vmatpush3.bf16.msra.mxu1 %v1180_v6 }
 0x116   : > { %1126 = vmatprep.subr.bf16.mxu1 %v1194_v1 }
 0x119   : > { %1127 = vmatpush3.bf16.msra.mxu1 %v1181_v8 }
 0x11a   : > { %1128 = vmatprep.subr.bf16.mxu1 %v1194_v1 }
 0x11d   : > { %1129 = vmatpush3.bf16.msra.mxu1 %v1182_v9 }
 0x11e   : > { %1130 = vmatprep.subr.bf16.mxu1 %v1194_v1 }
 0x121   : > { %1131 = vmatpush3.bf16.msra.mxu1 %v1183_v10 }
 0x122   : > { %1132 = vmatprep.subr.bf16.mxu1 %v1194_v1 }
 0x125   : > { %1133 = vmatpush3.bf16.msra.mxu1 %v1184_v11 }
 0x126   : > { %1134 = vmatprep.subr.bf16.mxu1 %v1194_v1  ;;  %v993_v1 = vld [vmem:[%s1422_s4] ss:$0 sm:$0xff] }
 0x129   : > { %1135 = vmatpush3.bf16.msra.mxu1 %v1185_v12 }
 0x12c   : > { %1137 = vmatmul.mubr.bf16.vlgmr.msra.gmra.mrb[8].mxu1 %v715_v15 }
 0x1df   : > { %v617_v16 = vpop.f32.mrb[4].mxu1 }
 0x1e0   : > { %v1098_v17 = vpop.f32.mrb[5].mxu1 }
 0x1e1   : > { %v620_v18 = vpop.f32.mrb[6].mxu1 }
 0x1e2   : > { %v1099_v19 = vpop.f32.mrb[7].mxu1 }
 0x1e7   : > { %v706_v20 = vpop.f32.mrb[8].mxu0 }
 0x1e8   : > { %v707_v21 = vadd.f32 %v706_v20, %v617_v16  ;;  %v1118_v22 = vpop.f32.mrb[9].mxu0 }
 0x1e9   : > { %v709_v23 = vpop.f32.mrb[10].mxu0 }
 0x1ea   : > { %v710_v24 = vadd.f32 %v709_v23, %v620_v18  ;;  %v1119_v25 = vpop.f32.mrb[11].mxu0 }
 0x1ff   : > { %v815_v26 = vpop.f32.mrb[8].mxu1 }
 0x200   : > { %v822_v27 = vadd.f32 %v815_v26, %v707_v21  ;;  %v1138_v28 = vpop.f32.mrb[9].mxu1 }
 0x201   : > { %v818_v29 = vpop.f32.mrb[10].mxu1 }
 0x202   : > { %v831_v30 = vadd.f32 %v993_v1, %v822_v27  ;;  %v823_v31 = vadd.f32 %v818_v29, %v710_v24  ;;  %v1139_v32 = vpop.f32.mrb[11].mxu1 }
 0x204   : > { %vm833_vm5 = vcmp.gt.f32.partialorder %v831_v30, 0.0  ;;  %v835_v33 = vmul.f32 0.01, %v831_v30  ;;  %v832_v34 = vadd.f32 %v993_v1, %v823_v31 }
 0x206   : > { %v837_v35 = vsel %vm833_vm5, %v831_v30, %v835_v33  ;;  %vm834_vm6 = vcmp.gt.f32.partialorder %v832_v34, 0.0  ;;  %v836_v36 = vmul.f32 0.01, %v832_v34 }
 0x207   : > { %839 = vst [vmem:[%s224_s9] sm:$0xff] %v837_v35 }
 0x208   : > { %v838_v37 = vsel %vm834_vm6, %v832_v34, %v836_v36 }
 0x209   : > { %840 = vst [vmem:[%s224_s9 + $0x8] sm:$0xff] %v838_v37 }
 0x20a PF: > { %s15_s18 = sadd.s32 1, %s1192_s18  }
 0x20b   : > { %p12_p4 = scmp.ge.s32.totalorder %s15_s18, 4  }
 0x20d   :  { %14 = sbr.rel (!%p12_p4) target bundleno = 1 (0x1), region = 74 }

</bundles_post_ra>
